<compile_context>
chip_gen: v7x
topology: tpu7x:2x2x1
jax: 0.10.0
libtpu: 0.0.40
codegen_flags: <defaults>
</compile_context>

<pallas_src>
import functools

import jax
import jax.numpy as jnp
from jax.experimental import pallas as pl
from jax.experimental.pallas import tpu as pltpu

# ----------------------------- config ---------------------------------------
ROBO_LINK_DIM = 12
ROBO_BASE_DIM = 7
ROBO_GOAL_DIM = 6
OBJ_DIM = 10
MAX_NUM_LINKS = 4
ADDITIONAL_DIM = 4            # base(1) + goal(1) + obj(1) + obstacle(1)
FEATURE_DIM = 32              # d_model

SEQ = MAX_NUM_LINKS + ADDITIONAL_DIM          # 8 tokens
OUT_W = SEQ * FEATURE_DIM                     # 256 = lane-dense output width
LINK_FLAT = MAX_NUM_LINKS * ROBO_LINK_DIM     # 48
D_COMPACT = ROBO_BASE_DIM + LINK_FLAT + ROBO_GOAL_DIM + 2 * OBJ_DIM   # 81


def _round_up(a, m):
    return (a + m - 1) // m * m


# ----------------------------- Pallas kernel --------------------------------
def obs_feature_kernel(base_ref, link_ref, goal_ref, obj_ref, obst_ref,
                       mask_ref, wb_ref, wl_ref, wg_ref, wo_ref, ws_ref,
                       bp_ref, sel_ref, o_ref):
    """One block of TB batch rows per grid step.

    base_ref (TB,7) link_ref (TB,48) goal_ref (TB,6) obj_ref/obst_ref (TB,10)
    mask_ref (TB,8) — all f32 straight from HBM (no wrapper converts).
    w*_ref: f32 block-diagonal (d_in, 256) weights (resident in VMEM).
    bp_ref (1,256) f32 fused bias+pos row. sel_ref (8,256) bf16 0/1 selector.
    o_ref (TB,256) bf16 (or f32) lane-dense output.
    """
    f32 = jnp.float32
    # Five small-K matmuls into one f32 (TB, 256) accumulator — equivalent to a
    # single (TB,81)@(81,256) block-diagonal matmul, without an in-kernel concat.
    acc = jnp.dot(base_ref[...], wb_ref[...], preferred_element_type=f32)
    acc = acc + jnp.dot(link_ref[...], wl_ref[...], preferred_element_type=f32)
    acc = acc + jnp.dot(goal_ref[...], wg_ref[...], preferred_element_type=f32)
    acc = acc + jnp.dot(obj_ref[...], wo_ref[...], preferred_element_type=f32)
    acc = acc + jnp.dot(obst_ref[...], ws_ref[...], preferred_element_type=f32)
    acc = acc + bp_ref[...]                       # (1,256) broadcast add

    # Expand the (TB, 8) 0/1 token mask to (TB, 256) lanes with a tiny K=8
    # selector matmul. mask and sel are exactly representable in bf16, so the
    # single-pass bf16 MXU matmul is exact.
    mask_rep = jnp.dot(mask_ref[...].astype(jnp.bfloat16), sel_ref[...],
                       preferred_element_type=f32)

    o_ref[...] = (acc * mask_rep).astype(o_ref.dtype)          # full-width vst


def obs_feature_extractor_pallas(x, packed_weights, *, block_b=4096,
                                 out_dtype=jnp.bfloat16):
    """x: dict of f32 obs tensors (module layout). Returns (bs, SEQ, 32)."""
    wb, wl, wg, wo, ws, bp, sel = packed_weights
    bs = x["robo_base"].shape[0]

    # Free row-major reshapes only — no dtype converts, no padding/scatter.
    base = x["robo_base"].reshape(bs, ROBO_BASE_DIM)
    link = x["robo_link"].reshape(bs, LINK_FLAT)
    goal = x["robo_goal"].reshape(bs, ROBO_GOAL_DIM)
    obj = x["obj"].reshape(bs, OBJ_DIM)
    obst = x["obstacle"].reshape(bs, OBJ_DIM)
    mask = x["obs_mask"].reshape(bs, SEQ)

    # Adaptive tile: >=2 grid steps when possible (v7x megacore split of the
    # batch axis), tile rounded to a sublane multiple so any ragged-tail pad
    # is at most a few rows (instead of up to a full tile).
    if bs < 16:
        n_steps, tb = 1, bs          # single whole-array block (no pad)
    else:
        n_steps = max(2, pl.cdiv(bs, block_b))
        tb = _round_up(pl.cdiv(bs, n_steps), 8)
        n_steps = pl.cdiv(bs, tb)
    bsp = n_steps * tb
    pad = bsp - bs
    if pad:
        pad2 = lambda a: jnp.pad(a, ((0, pad), (0, 0)))
        base, link, goal, obj, obst, mask = map(
            pad2, (base, link, goal, obj, obst, mask))
    grid = (n_steps,)

    def row_spec(d):
        return pl.BlockSpec((tb, d), lambda i: (i, 0))

    def full_spec(r, c):
        return pl.BlockSpec((r, c), lambda i: (0, 0))

    out_bpe = jnp.dtype(out_dtype).itemsize
    act_bytes = bsp * (D_COMPACT + SEQ) * 4                    # raw f32 reads
    w_bytes = (D_COMPACT + 1) * OUT_W * 4 + SEQ * OUT_W * 2    # f32 W + bf16 sel
    out_bytes = bsp * OUT_W * out_bpe

    out = pl.pallas_call(
        obs_feature_kernel,
        out_shape=jax.ShapeDtypeStruct((bsp, OUT_W), out_dtype),
        grid=grid,
        in_specs=[
            row_spec(ROBO_BASE_DIM),
            row_spec(LINK_FLAT),
            row_spec(ROBO_GOAL_DIM),
            row_spec(OBJ_DIM),
            row_spec(OBJ_DIM),
            row_spec(SEQ),
            full_spec(ROBO_BASE_DIM, OUT_W),
            full_spec(LINK_FLAT, OUT_W),
            full_spec(ROBO_GOAL_DIM, OUT_W),
            full_spec(OBJ_DIM, OUT_W),
            full_spec(OBJ_DIM, OUT_W),
            full_spec(1, OUT_W),
            full_spec(SEQ, OUT_W),
        ],
        out_specs=pl.BlockSpec((tb, OUT_W), lambda i: (i, 0)),
        compiler_params=pltpu.CompilerParams(
            dimension_semantics=("parallel",)),
        cost_estimate=pl.CostEstimate(
            flops=2 * bsp * OUT_W * (D_COMPACT + SEQ),
            transcendentals=0,
            bytes_accessed=act_bytes + w_bytes + out_bytes),
    )(base, link, goal, obj, obst, mask, wb, wl, wg, wo, ws, bp, sel)

    if pad:
        out = out[:bs]
    return out.reshape(bs, SEQ, FEATURE_DIM)   # free row-major reshape


# ----------------------------- params / glue (plain JAX) --------------------
def orthogonal(key, rows, cols, gain):
    """Deterministic stand-in for nn.init.orthogonal_ (gain='relu')."""
    a = jax.random.normal(key, (max(rows, cols), min(rows, cols)), jnp.float32)
    q, r = jnp.linalg.qr(a)
    q = q * jnp.sign(jnp.diag(r))
    q = q[:rows, :cols] if rows >= cols else q.T[:rows, :cols]
    return gain * q


def make_params(key):
    gain = jnp.sqrt(2.0)  # calculate_gain('relu')
    ks = jax.random.split(key, 12)
    p = {}
    # Linear weights stored as (in_dim, out_dim) for x @ W.
    p["w_base"] = orthogonal(ks[0], ROBO_BASE_DIM, FEATURE_DIM, gain)
    p["b_base"] = jnp.zeros((FEATURE_DIM,), jnp.float32)
    p["w_link"] = orthogonal(ks[1], ROBO_LINK_DIM, FEATURE_DIM, gain)
    p["b_link"] = jnp.zeros((FEATURE_DIM,), jnp.float32)
    p["w_goal"] = orthogonal(ks[2], ROBO_GOAL_DIM, FEATURE_DIM, gain)
    p["b_goal"] = jnp.zeros((FEATURE_DIM,), jnp.float32)
    p["w_obj"] = orthogonal(ks[3], OBJ_DIM, FEATURE_DIM, gain)
    p["b_obj"] = jnp.zeros((FEATURE_DIM,), jnp.float32)
    # obstacle_embed: PyTorch default Linear init (uniform), emulated.
    lim = 1.0 / jnp.sqrt(OBJ_DIM)
    p["w_obst"] = jax.random.uniform(ks[4], (OBJ_DIM, FEATURE_DIM),
                                     jnp.float32, -lim, lim)
    p["b_obst"] = jax.random.uniform(ks[5], (FEATURE_DIM,),
                                     jnp.float32, -lim, lim)
    # positional embeddings ~ randn(1,1,d)
    p["pos_link"] = jax.random.normal(ks[6], (FEATURE_DIM,), jnp.float32)
    p["pos_base"] = jax.random.normal(ks[7], (FEATURE_DIM,), jnp.float32)
    p["pos_goal"] = jax.random.normal(ks[8], (FEATURE_DIM,), jnp.float32)
    p["pos_obj"] = jax.random.normal(ks[9], (FEATURE_DIM,), jnp.float32)
    p["pos_obst"] = jax.random.normal(ks[10], (FEATURE_DIM,), jnp.float32)
    return p


def pack_weights(p):
    """Build per-type block-diagonal (d_in, 256) f32 weights, a fused bias+pos
    row, and the (8,256) bf16 mask selector.

    Output column group s*32:(s+1)*32 corresponds to token s in the order
    [base, link0..link3, goal, obj, obstacle] (matching torch.cat dim=1).
    Done once; everything here stays resident in VMEM (constant block index).
    Weights are kept f32 for numerical parity with the PyTorch module.
    """
    wb = jnp.zeros((ROBO_BASE_DIM, OUT_W), jnp.float32)
    wb = wb.at[:, 0:FEATURE_DIM].set(p["w_base"])
    wl = jnp.zeros((LINK_FLAT, OUT_W), jnp.float32)
    for t in range(MAX_NUM_LINKS):
        wl = wl.at[t * ROBO_LINK_DIM:(t + 1) * ROBO_LINK_DIM,
                   (1 + t) * FEATURE_DIM:(2 + t) * FEATURE_DIM].set(p["w_link"])
    wg = jnp.zeros((ROBO_GOAL_DIM, OUT_W), jnp.float32)
    wg = wg.at[:, 5 * FEATURE_DIM:6 * FEATURE_DIM].set(p["w_goal"])
    wo = jnp.zeros((OBJ_DIM, OUT_W), jnp.float32)
    wo = wo.at[:, 6 * FEATURE_DIM:7 * FEATURE_DIM].set(p["w_obj"])
    ws = jnp.zeros((OBJ_DIM, OUT_W), jnp.float32)
    ws = ws.at[:, 7 * FEATURE_DIM:8 * FEATURE_DIM].set(p["w_obst"])

    rows = ([p["b_base"] + p["pos_base"]]
            + [p["b_link"] + p["pos_link"]] * MAX_NUM_LINKS
            + [p["b_goal"] + p["pos_goal"]]
            + [p["b_obj"] + p["pos_obj"]]
            + [p["b_obst"] + p["pos_obst"]])
    bp = jnp.concatenate(rows, axis=0).reshape(1, OUT_W).astype(jnp.float32)

    # (8, 256) 0/1 selector: lane group t*32:(t+1)*32 copies mask token t.
    sel = (jnp.arange(OUT_W) // FEATURE_DIM
           == jnp.arange(SEQ)[:, None]).astype(jnp.bfloat16)

    return (wb, wl, wg, wo, ws, bp, sel)


def reference_forward(x, p):
    """Pure-JAX f32 reference mirroring the PyTorch forward (for validation)."""
    base = x["robo_base"] @ p["w_base"] + p["b_base"] + p["pos_base"]
    link = x["robo_link"] @ p["w_link"] + p["b_link"] + p["pos_link"]
    goal = x["robo_goal"] @ p["w_goal"] + p["b_goal"] + p["pos_goal"]
    obj = x["obj"] @ p["w_obj"] + p["b_obj"] + p["pos_obj"]
    obst = x["obstacle"] @ p["w_obst"] + p["b_obst"] + p["pos_obst"]
    obs_embed = jnp.concatenate([base, link, goal, obj, obst], axis=1)
    return obs_embed * x["obs_mask"]


def make_inputs(key, bs):
    kis = jax.random.split(key, 6)
    return {
        "robo_base": jax.random.normal(kis[0], (bs, 1, ROBO_BASE_DIM), jnp.float32),
        "robo_link": jax.random.normal(kis[1], (bs, MAX_NUM_LINKS, ROBO_LINK_DIM), jnp.float32),
        "robo_goal": jax.random.normal(kis[2], (bs, 1, ROBO_GOAL_DIM), jnp.float32),
        "obj": jax.random.normal(kis[3], (bs, 1, OBJ_DIM), jnp.float32),
        "obstacle": jax.random.normal(kis[4], (bs, 1, OBJ_DIM), jnp.float32),
        "obs_mask": (jax.random.uniform(kis[5], (bs, SEQ, 1)) > 0.3).astype(jnp.float32),
    }


# ----------------------------- main ------------------------------------------
if __name__ == "__main__":
    key = jax.random.PRNGKey(0)
    k_param, k_in1, k_in2 = jax.random.split(key, 3)
    params = make_params(k_param)
    packed = pack_weights(params)

    # Small test (bs=2): grid collapses to a single whole-array block.
    bs = 2
    x = make_inputs(k_in1, bs)
    out = obs_feature_extractor_pallas(x, packed)          # default bf16 out
    out = jax.block_until_ready(out)
    ref = reference_forward(x, params)
    assert out.shape == (bs, SEQ, FEATURE_DIM), out.shape
    # Default MXU matmul precision + bf16 output rounding -> loosened tolerance.
    assert jnp.allclose(out.astype(jnp.float32), ref, atol=5e-2, rtol=5e-2), \
        "mismatch vs reference (bs=2)"

    # Larger test: multi-step grid, adaptive tiling with a small ragged-tail
    # pad, and strict f32 output parity path.
    bs2 = 600
    x2 = make_inputs(k_in2, bs2)
    out2 = jax.block_until_ready(
        obs_feature_extractor_pallas(x2, packed, block_b=512,
                                     out_dtype=jnp.float32))
    ref2 = reference_forward(x2, params)
    assert out2.shape == (bs2, SEQ, FEATURE_DIM), out2.shape
    assert jnp.allclose(out2, ref2, atol=5e-2, rtol=5e-2), \
        "mismatch vs reference (bs=600)"

    # TODO(synk): cfg.OBSERVATION.HIGH_DIM=True branch (PointCloudEncoder with
    # cuboid point-cloud generation), cfg.MODEL.IMPLICIT_OBS, PREV_ACTION slicing
    # and the optional attention layer are config-off branches and not implemented.
    print("KERNEL_OK")
</pallas_src>

<mosaic_0001>
module attributes {stable_mosaic.version = 11 : i64} {
  func.func @obs_feature_kernel(%arg0: i32, %arg1: memref<2x7xf32, #tpu.memory_space<vmem>>, %arg2: memref<2x48xf32, #tpu.memory_space<vmem>>, %arg3: memref<2x6xf32, #tpu.memory_space<vmem>>, %arg4: memref<2x10xf32, #tpu.memory_space<vmem>>, %arg5: memref<2x10xf32, #tpu.memory_space<vmem>>, %arg6: memref<2x8xf32, #tpu.memory_space<vmem>>, %arg7: memref<7x256xf32, #tpu.memory_space<vmem>>, %arg8: memref<48x256xf32, #tpu.memory_space<vmem>>, %arg9: memref<6x256xf32, #tpu.memory_space<vmem>>, %arg10: memref<10x256xf32, #tpu.memory_space<vmem>>, %arg11: memref<10x256xf32, #tpu.memory_space<vmem>>, %arg12: memref<1x256xf32, #tpu.memory_space<vmem>>, %arg13: memref<8x256xbf16, #tpu.memory_space<vmem>>, %arg14: memref<2x256xbf16, #tpu.memory_space<vmem>>) attributes {dimension_semantics = [#tpu.dimension_semantics<parallel>], iteration_bounds = array<i64: 1>, scalar_prefetch = 0 : i64, scratch_operands = 0 : i64, tpu.core_type = #tpu.core_type<tc>, window_params = [{transform_indices = @transform_0, window_bounds = array<i64: 2, 7>}, {transform_indices = @transform_1, window_bounds = array<i64: 2, 48>}, {transform_indices = @transform_2, window_bounds = array<i64: 2, 6>}, {transform_indices = @transform_3, window_bounds = array<i64: 2, 10>}, {transform_indices = @transform_4, window_bounds = array<i64: 2, 10>}, {transform_indices = @transform_5, window_bounds = array<i64: 2, 8>}, {pipeline_mode = #tpu.pipeline_mode<synchronous>, transform_indices = @transform_6, window_bounds = array<i64: 7, 256>}, {pipeline_mode = #tpu.pipeline_mode<synchronous>, transform_indices = @transform_7, window_bounds = array<i64: 48, 256>}, {pipeline_mode = #tpu.pipeline_mode<synchronous>, transform_indices = @transform_8, window_bounds = array<i64: 6, 256>}, {pipeline_mode = #tpu.pipeline_mode<synchronous>, transform_indices = @transform_9, window_bounds = array<i64: 10, 256>}, {pipeline_mode = #tpu.pipeline_mode<synchronous>, transform_indices = @transform_10, window_bounds = array<i64: 10, 256>}, {pipeline_mode = #tpu.pipeline_mode<synchronous>, transform_indices = @transform_11, window_bounds = array<i64: 1, 256>}, {pipeline_mode = #tpu.pipeline_mode<synchronous>, transform_indices = @transform_12, window_bounds = array<i64: 8, 256>}, {transform_indices = @transform_13, window_bounds = array<i64: 2, 256>}]} {
    %c0 = arith.constant 0 : index
    %c0_0 = arith.constant 0 : index
    %0 = vector.load %arg1[%c0, %c0_0] : memref<2x7xf32, #tpu.memory_space<vmem>>, vector<2x7xf32>
    %c0_1 = arith.constant 0 : index
    %c0_2 = arith.constant 0 : index
    %1 = vector.load %arg7[%c0_1, %c0_2] : memref<7x256xf32, #tpu.memory_space<vmem>>, vector<7x256xf32>
    %cst = arith.constant dense<0.000000e+00> : vector<2x256xf32>
    %2 = tpu.matmul %0, %1, %cst {dimension_numbers = #tpu.dot_dimension_numbers<[1], [0], [0], [1], [0, 0, 1, 1], [], []>} : vector<2x7xf32>, vector<7x256xf32>, vector<2x256xf32> -> vector<2x256xf32>
    %c0_3 = arith.constant 0 : index
    %c0_4 = arith.constant 0 : index
    %3 = vector.load %arg2[%c0_3, %c0_4] : memref<2x48xf32, #tpu.memory_space<vmem>>, vector<2x48xf32>
    %c0_5 = arith.constant 0 : index
    %c0_6 = arith.constant 0 : index
    %4 = vector.load %arg8[%c0_5, %c0_6] : memref<48x256xf32, #tpu.memory_space<vmem>>, vector<48x256xf32>
    %cst_7 = arith.constant dense<0.000000e+00> : vector<2x256xf32>
    %5 = tpu.matmul %3, %4, %cst_7 {dimension_numbers = #tpu.dot_dimension_numbers<[1], [0], [0], [1], [0, 0, 1, 1], [], []>} : vector<2x48xf32>, vector<48x256xf32>, vector<2x256xf32> -> vector<2x256xf32>
    %6 = arith.addf %2, %5 : vector<2x256xf32>
    %c0_8 = arith.constant 0 : index
    %c0_9 = arith.constant 0 : index
    %7 = vector.load %arg3[%c0_8, %c0_9] : memref<2x6xf32, #tpu.memory_space<vmem>>, vector<2x6xf32>
    %c0_10 = arith.constant 0 : index
    %c0_11 = arith.constant 0 : index
    %8 = vector.load %arg9[%c0_10, %c0_11] : memref<6x256xf32, #tpu.memory_space<vmem>>, vector<6x256xf32>
    %cst_12 = arith.constant dense<0.000000e+00> : vector<2x256xf32>
    %9 = tpu.matmul %7, %8, %cst_12 {dimension_numbers = #tpu.dot_dimension_numbers<[1], [0], [0], [1], [0, 0, 1, 1], [], []>} : vector<2x6xf32>, vector<6x256xf32>, vector<2x256xf32> -> vector<2x256xf32>
    %10 = arith.addf %6, %9 : vector<2x256xf32>
    %c0_13 = arith.constant 0 : index
    %c0_14 = arith.constant 0 : index
    %11 = vector.load %arg4[%c0_13, %c0_14] : memref<2x10xf32, #tpu.memory_space<vmem>>, vector<2x10xf32>
    %c0_15 = arith.constant 0 : index
    %c0_16 = arith.constant 0 : index
    %12 = vector.load %arg10[%c0_15, %c0_16] : memref<10x256xf32, #tpu.memory_space<vmem>>, vector<10x256xf32>
    %cst_17 = arith.constant dense<0.000000e+00> : vector<2x256xf32>
    %13 = tpu.matmul %11, %12, %cst_17 {dimension_numbers = #tpu.dot_dimension_numbers<[1], [0], [0], [1], [0, 0, 1, 1], [], []>} : vector<2x10xf32>, vector<10x256xf32>, vector<2x256xf32> -> vector<2x256xf32>
    %14 = arith.addf %10, %13 : vector<2x256xf32>
    %c0_18 = arith.constant 0 : index
    %c0_19 = arith.constant 0 : index
    %15 = vector.load %arg5[%c0_18, %c0_19] : memref<2x10xf32, #tpu.memory_space<vmem>>, vector<2x10xf32>
    %c0_20 = arith.constant 0 : index
    %c0_21 = arith.constant 0 : index
    %16 = vector.load %arg11[%c0_20, %c0_21] : memref<10x256xf32, #tpu.memory_space<vmem>>, vector<10x256xf32>
    %cst_22 = arith.constant dense<0.000000e+00> : vector<2x256xf32>
    %17 = tpu.matmul %15, %16, %cst_22 {dimension_numbers = #tpu.dot_dimension_numbers<[1], [0], [0], [1], [0, 0, 1, 1], [], []>} : vector<2x10xf32>, vector<10x256xf32>, vector<2x256xf32> -> vector<2x256xf32>
    %18 = arith.addf %14, %17 : vector<2x256xf32>
    %c0_23 = arith.constant 0 : index
    %c0_24 = arith.constant 0 : index
    %19 = vector.load %arg12[%c0_23, %c0_24] : memref<1x256xf32, #tpu.memory_space<vmem>>, vector<1x256xf32>
    %20 = vector.broadcast %19 : vector<1x256xf32> to vector<2x256xf32>
    %21 = arith.addf %18, %20 : vector<2x256xf32>
    %c0_25 = arith.constant 0 : index
    %c0_26 = arith.constant 0 : index
    %22 = vector.load %arg6[%c0_25, %c0_26] : memref<2x8xf32, #tpu.memory_space<vmem>>, vector<2x8xf32>
    %23 = arith.truncf %22 : vector<2x8xf32> to vector<2x8xbf16>
    %c0_27 = arith.constant 0 : index
    %c0_28 = arith.constant 0 : index
    %24 = vector.load %arg13[%c0_27, %c0_28] : memref<8x256xbf16, #tpu.memory_space<vmem>>, vector<8x256xbf16>
    %cst_29 = arith.constant dense<0.000000e+00> : vector<2x256xf32>
    %25 = tpu.matmul %23, %24, %cst_29 {dimension_numbers = #tpu.dot_dimension_numbers<[1], [0], [0], [1], [0, 0, 1, 1], [], []>} : vector<2x8xbf16>, vector<8x256xbf16>, vector<2x256xf32> -> vector<2x256xf32>
    %26 = arith.mulf %21, %25 : vector<2x256xf32>
    %27 = arith.truncf %26 : vector<2x256xf32> to vector<2x256xbf16>
    %c0_30 = arith.constant 0 : index
    %c0_31 = arith.constant 0 : index
    %28 = vector.load %arg14[%c0_30, %c0_31] : memref<2x256xbf16, #tpu.memory_space<vmem>>, vector<2x256xbf16>
    tpu.vector_store %arg14[%c0_30, %c0_31], %27 {strides = array<i32>} : memref<2x256xbf16, #tpu.memory_space<vmem>>, vector<2x256xbf16>,
    return
  }
  func.func @transform_0(%arg0: i32) -> (i32, i32) {
    %c0_i32 = arith.constant 0 : i32
    %c0_i32_0 = arith.constant 0 : i32
    return %arg0, %c0_i32 : i32, i32
  }
  func.func @transform_1(%arg0: i32) -> (i32, i32) {
    %c0_i32 = arith.constant 0 : i32
    %c0_i32_0 = arith.constant 0 : i32
    return %arg0, %c0_i32 : i32, i32
  }
  func.func @transform_2(%arg0: i32) -> (i32, i32) {
    %c0_i32 = arith.constant 0 : i32
    %c0_i32_0 = arith.constant 0 : i32
    return %arg0, %c0_i32 : i32, i32
  }
  func.func @transform_3(%arg0: i32) -> (i32, i32) {
    %c0_i32 = arith.constant 0 : i32
    %c0_i32_0 = arith.constant 0 : i32
    return %arg0, %c0_i32 : i32, i32
  }
  func.func @transform_4(%arg0: i32) -> (i32, i32) {
    %c0_i32 = arith.constant 0 : i32
    %c0_i32_0 = arith.constant 0 : i32
    return %arg0, %c0_i32 : i32, i32
  }
  func.func @transform_5(%arg0: i32) -> (i32, i32) {
    %c0_i32 = arith.constant 0 : i32
    %c0_i32_0 = arith.constant 0 : i32
    return %arg0, %c0_i32 : i32, i32
  }
  func.func @transform_6(%arg0: i32) -> (i32, i32) {
    %c0_i32 = arith.constant 0 : i32
    %c0_i32_0 = arith.constant 0 : i32
    %c0_i32_1 = arith.constant 0 : i32
    return %c0_i32, %c0_i32_0 : i32, i32
  }
  func.func @transform_7(%arg0: i32) -> (i32, i32) {
    %c0_i32 = arith.constant 0 : i32
    %c0_i32_0 = arith.constant 0 : i32
    %c0_i32_1 = arith.constant 0 : i32
    return %c0_i32, %c0_i32_0 : i32, i32
  }
  func.func @transform_8(%arg0: i32) -> (i32, i32) {
    %c0_i32 = arith.constant 0 : i32
    %c0_i32_0 = arith.constant 0 : i32
    %c0_i32_1 = arith.constant 0 : i32
    return %c0_i32, %c0_i32_0 : i32, i32
  }
  func.func @transform_9(%arg0: i32) -> (i32, i32) {
    %c0_i32 = arith.constant 0 : i32
    %c0_i32_0 = arith.constant 0 : i32
    %c0_i32_1 = arith.constant 0 : i32
    return %c0_i32, %c0_i32_0 : i32, i32
  }
  func.func @transform_10(%arg0: i32) -> (i32, i32) {
    %c0_i32 = arith.constant 0 : i32
    %c0_i32_0 = arith.constant 0 : i32
    %c0_i32_1 = arith.constant 0 : i32
    return %c0_i32, %c0_i32_0 : i32, i32
  }
  func.func @transform_11(%arg0: i32) -> (i32, i32) {
    %c0_i32 = arith.constant 0 : i32
    %c0_i32_0 = arith.constant 0 : i32
    %c0_i32_1 = arith.constant 0 : i32
    return %c0_i32, %c0_i32_0 : i32, i32
  }
  func.func @transform_12(%arg0: i32) -> (i32, i32) {
    %c0_i32 = arith.constant 0 : i32
    %c0_i32_0 = arith.constant 0 : i32
    %c0_i32_1 = arith.constant 0 : i32
    return %c0_i32, %c0_i32_0 : i32, i32
  }
  func.func @transform_13(%arg0: i32) -> (i32, i32) {
    %c0_i32 = arith.constant 0 : i32
    %c0_i32_0 = arith.constant 0 : i32
    return %arg0, %c0_i32 : i32, i32
  }
}

</mosaic_0001>

<bundles_post_ra>
// kernel: tpu_custom_call.1
= control target key start
LH: loop header
LB: loop body
LE: loop exit
PB: predicated region body
PF: predicated region fallthrough
CT: control target
= control target key end

     0   :  { %18 = vsyncpa [#allocation3], 0  ;;  %s1352_s0 = inlined_call_operand.hbm [shape: f32[2,7], index: 0, kind: input, shape index: {}]   ;;  %s1353_s1 = inlined_call_operand.hbm [shape: f32[2,48], index: 1, kind: input, shape index: {}]   ;;  %s1354_s2 = inlined_call_operand.hbm [shape: f32[2,6], index: 2, kind: input, shape index: {}]   ;;  %s1355_s3 = inlined_call_operand.hbm [shape: f32[2,10], index: 3, kind: input, shape index: {}]   ;;  %s1356_s4 = inlined_call_operand.hbm [shape: f32[2,10], index: 4, kind: input, shape index: {}]   ;;  %s1357_s5 = inlined_call_operand.hbm [shape: f32[2,8], index: 5, kind: input, shape index: {}]   ;;  %s1358_s6 = inlined_call_operand.hbm [shape: f32[7,256], index: 6, kind: input, shape index: {}]   ;;  %s1359_s7 = inlined_call_operand.hbm [shape: f32[48,256], index: 7, kind: input, shape index: {}]   ;;  %s1360_s8 = inlined_call_operand.hbm [shape: f32[6,256], index: 8, kind: input, shape index: {}]   ;;  %s1361_s9 = inlined_call_operand.vmem [shape: f32[10,256], index: 9, kind: input, shape index: {}]   ;;  %s1362_s10 = inlined_call_operand.hbm [shape: f32[10,256], index: 10, kind: input, shape index: {}]   ;;  %s1363_s11 = inlined_call_operand.hbm [shape: f32[1,256], index: 11, kind: input, shape index: {}]   ;;  %s1364_s12 = inlined_call_operand.vmem [shape: bf16[8,256], index: 12, kind: input, shape index: {}]   ;;  %s1365_s13 = inlined_call_operand.hbm [shape: bf16[2,256], index: 13, kind: output, shape index: {}]  }
   0x1   :  { %19 = vsyncpa [#allocation6], 0 }
   0x2   :  { %20 = vsyncpa [#allocation9], 0 }
   0x3   :  { %21 = vsyncpa [#allocation12], 0 }
   0x4   :  { %22 = vsyncpa [#allocation15], 0 }
   0x5   :  { %23 = vsyncpa [#allocation18], 0 }
   0x6   :  { %24 = vsyncpa [#allocation4], 0  ;;  %s1079_s25 = smov [#allocation5]   ;;  %s1080_s27 = smov [#allocation8]  }
   0x7   :  { %s41_s26 = sshll.u32 %s1079_s25, 4  ;;  %s61_s28 = sshll.u32 %s1080_s27, 4  ;;  %s42_s26 = int_to_ptr.vmem [resolvable:$true] %s41_s26  ;;  %s62_s28 = int_to_ptr.vmem [resolvable:$true] %s61_s28 }
   0x8   :  { %s801_s14 = scalar_lea.hbm %s1353_s1, 32 }
   0x9   :  { %p802_p0 = scmp.ne.s32.totalorder %s1353_s1, %s801_s14  ;;  %p805_p1 = scmp.lt.u32.totalorder %s801_s14, %s1353_s1 }
   0xb   :  { %p807_p2 = pnand %p805_p1, %p802_p0 }
   0xd   :  { %810 = shalt.err (!%p807_p2)
}
   0xe   :  { %s811_s19 = scalar_lea.vmem %s42_s26, 32  ;;  %p816_p4 = scmp.lt.s32.totalorder %s42_s26, %s42_s26 }
   0xf   :  { %p812_p3 = scmp.ne.s32.totalorder %s42_s26, %s811_s19  ;;  %p817_p5 = scmp.lt.s32.totalorder %s811_s19, %s811_s19 }
  0x11   :  { %p818_p6 = por %p817_p5, %p816_p4 }
  0x13   :  { %p819_p7 = pnand %p818_p6, %p812_p3 }
  0x15   :  { %822 = shalt.err (!%p819_p7)
}
  0x16   :  { %44 = dma.hbm_to_vmem [thread:$0]  %s1353_s1, 32, %s42_s26, [#allocation6]  }
  0x17   :  { %s823_s24 = scalar_lea.hbm %s1355_s3, 32 }
  0x18   :  { %p824_p8 = scmp.ne.s32.totalorder %s1355_s3, %s823_s24  ;;  %p827_p9 = scmp.lt.u32.totalorder %s823_s24, %s1355_s3 }
  0x1a   :  { %p829_p10 = pnand %p827_p9, %p824_p8 }
  0x1c   :  { %832 = shalt.err (!%p829_p10)
}
  0x1d   :  { %s833_s14 = scalar_lea.vmem %s62_s28, 32  ;;  %p838_p12 = scmp.lt.s32.totalorder %s62_s28, %s62_s28 }
  0x1e   :  { %p834_p11 = scmp.ne.s32.totalorder %s62_s28, %s833_s14  ;;  %p839_p13 = scmp.lt.s32.totalorder %s833_s14, %s833_s14 }
  0x20   :  { %p840_p0 = por %p839_p13, %p838_p12 }
  0x22   :  { %p841_p1 = pnand %p840_p0, %p834_p11 }
  0x24   :  { %844 = shalt.err (!%p841_p1)
}
  0x25   :  { %64 = dma.hbm_to_vmem [thread:$0]  %s1355_s3, 32, %s62_s28, [#allocation9]  }
  0x26   :  { %s1081_s15 = smov [#allocation11]   ;;  %s1082_s17 = smov [#allocation14]  }
  0x27   :  { %s81_s16 = sshll.u32 %s1081_s15, 4  ;;  %s100_s18 = sshll.u32 %s1082_s17, 4  ;;  %s82_s16 = int_to_ptr.vmem [resolvable:$true] %s81_s16  ;;  %s1191_s18 = int_to_ptr.vmem [resolvable:$true] %s100_s18 }
  0x28   :  { %s845_s21 = scalar_lea.hbm %s1357_s5, 32 }
  0x29   :  { %p846_p2 = scmp.ne.s32.totalorder %s1357_s5, %s845_s21  ;;  %p849_p3 = scmp.lt.u32.totalorder %s845_s21, %s1357_s5 }
  0x2b   :  { %p851_p4 = pnand %p849_p3, %p846_p2 }
  0x2d   :  { %854 = shalt.err (!%p851_p4)
}
  0x2e   :  { %s855_s3 = scalar_lea.vmem %s82_s16, 32  ;;  %p860_p6 = scmp.lt.s32.totalorder %s82_s16, %s82_s16 }
  0x2f   :  { %p856_p5 = scmp.ne.s32.totalorder %s82_s16, %s855_s3  ;;  %p861_p7 = scmp.lt.s32.totalorder %s855_s3, %s855_s3 }
  0x31   :  { %p862_p8 = por %p861_p7, %p860_p6 }
  0x33   :  { %p863_p9 = pnand %p862_p8, %p856_p5 }
  0x35   :  { %866 = shalt.err (!%p863_p9)
}
  0x36   :  { %84 = dma.hbm_to_vmem [thread:$0]  %s1357_s5, 32, %s82_s16, [#allocation12]  }
  0x37   :  { %s867_s14 = scalar_lea.hbm %s1359_s7, 1536 }
  0x38   :  { %p868_p10 = scmp.ne.s32.totalorder %s1359_s7, %s867_s14  ;;  %p871_p11 = scmp.lt.u32.totalorder %s867_s14, %s1359_s7 }
  0x3a   :  { %p873_p12 = pnand %p871_p11, %p868_p10 }
  0x3c   :  { %876 = shalt.err (!%p873_p12)
}
  0x3d   :  { %s877_s19 = scalar_lea.vmem %s1191_s18, 1536  ;;  %p882_p0 = scmp.lt.s32.totalorder %s1191_s18, %s1191_s18 }
  0x3e   :  { %p878_p13 = scmp.ne.s32.totalorder %s1191_s18, %s877_s19  ;;  %p883_p1 = scmp.lt.s32.totalorder %s877_s19, %s877_s19 }
  0x40   :  { %p884_p2 = por %p883_p1, %p882_p0 }
  0x42   :  { %p885_p3 = pnand %p884_p2, %p878_p13 }
  0x44   :  { %888 = shalt.err (!%p885_p3)
}
  0x45   :  { %s1083_s5 = smov 256   ;;  %s1084_s16 = smov 16  }
  0x46   :  { %106 = dma.hbm_to_vmem [thread:$0]  %s1359_s7, 1536, %s1191_s18, [#allocation15], %s1083_s5, %s1083_s5, %s1084_s16  }
  0x47   :  { %s1085_s22 = smov [#allocation17]   ;;  %s1086_s24 = smov [#allocation2]  }
  0x48   :  { %s124_s23 = sshll.u32 %s1085_s22, 4  ;;  %s31_s25 = sshll.u32 %s1086_s24, 4  ;;  %s125_s23 = int_to_ptr.vmem [resolvable:$true] %s124_s23  ;;  %s32_s25 = int_to_ptr.vmem [resolvable:$true] %s31_s25 }
  0x49   :  { %s889_s27 = scalar_lea.hbm %s1362_s10, 512 }
  0x4a   :  { %p890_p4 = scmp.ne.s32.totalorder %s1362_s10, %s889_s27  ;;  %p893_p5 = scmp.lt.u32.totalorder %s889_s27, %s1362_s10 }
  0x4c   :  { %p895_p6 = pnand %p893_p5, %p890_p4 }
  0x4e   :  { %898 = shalt.err (!%p895_p6)
}
  0x4f   :  { %s899_s7 = scalar_lea.vmem %s125_s23, 512  ;;  %p904_p8 = scmp.lt.s32.totalorder %s125_s23, %s125_s23 }
  0x50   :  { %p900_p7 = scmp.ne.s32.totalorder %s125_s23, %s899_s7  ;;  %p905_p9 = scmp.lt.s32.totalorder %s899_s7, %s899_s7 }
  0x52   :  { %p906_p10 = por %p905_p9, %p904_p8 }
  0x54   :  { %p907_p11 = pnand %p906_p10, %p900_p7 }
  0x56   :  { %910 = shalt.err (!%p907_p11)
}
  0x57   :  { %130 = dma.hbm_to_vmem [thread:$0]  %s1362_s10, 512, %s125_s23, [#allocation18], %s1083_s5, %s1083_s5, %s1084_s16  }
  0x58   :  { %s911_s19 = scalar_lea.hbm %s1352_s0, 32 }
  0x59   :  { %p912_p12 = scmp.ne.s32.totalorder %s1352_s0, %s911_s19  ;;  %p915_p13 = scmp.lt.u32.totalorder %s911_s19, %s1352_s0 }
  0x5b   :  { %p917_p0 = pnand %p915_p13, %p912_p12 }
  0x5d   :  { %920 = shalt.err (!%p917_p0)
}
  0x5e   :  { %s921_s3 = scalar_lea.vmem %s32_s25, 32  ;;  %p926_p2 = scmp.lt.s32.totalorder %s32_s25, %s32_s25 }
  0x5f   :  { %p922_p1 = scmp.ne.s32.totalorder %s32_s25, %s921_s3  ;;  %p927_p3 = scmp.lt.s32.totalorder %s921_s3, %s921_s3 }
  0x61   :  { %p928_p4 = por %p927_p3, %p926_p2 }
  0x63   :  { %p929_p5 = pnand %p928_p4, %p922_p1 }
  0x65   :  { %932 = shalt.err (!%p929_p5)
}
  0x66   :  { %34 = dma.hbm_to_vmem [thread:$0]  %s1352_s0, 32, %s32_s25, [#allocation3]  }
  0x67   :  { %s1087_s16 = smov [#allocation7]   ;;  %s1088_s28 = smov [#allocation10]  }
  0x68   :  { %s51_s23 = sshll.u32 %s1087_s16, 4  ;;  %s71_s27 = sshll.u32 %s1088_s28, 4  ;;  %s52_s23 = int_to_ptr.vmem [resolvable:$true] %s51_s23  ;;  %s72_s27 = int_to_ptr.vmem [resolvable:$true] %s71_s27 }
  0x69   :  { %s933_s14 = scalar_lea.hbm %s1354_s2, 32 }
  0x6a   :  { %p934_p6 = scmp.ne.s32.totalorder %s1354_s2, %s933_s14  ;;  %p937_p7 = scmp.lt.u32.totalorder %s933_s14, %s1354_s2 }
  0x6c   :  { %p939_p8 = pnand %p937_p7, %p934_p6 }
  0x6e   :  { %942 = shalt.err (!%p939_p8)
}
  0x6f   :  { %s943_s0 = scalar_lea.vmem %s52_s23, 32  ;;  %p948_p10 = scmp.lt.s32.totalorder %s52_s23, %s52_s23 }
  0x70   :  { %p944_p9 = scmp.ne.s32.totalorder %s52_s23, %s943_s0  ;;  %p949_p11 = scmp.lt.s32.totalorder %s943_s0, %s943_s0 }
  0x72   :  { %p950_p12 = por %p949_p11, %p948_p10 }
  0x74   :  { %p951_p13 = pnand %p950_p12, %p944_p9 }
  0x76   :  { %954 = shalt.err (!%p951_p13)
}
  0x77   :  { %54 = dma.hbm_to_vmem [thread:$0]  %s1354_s2, 32, %s52_s23, [#allocation6]  }
  0x78   :  { %s955_s20 = scalar_lea.hbm %s1356_s4, 32 }
  0x79   :  { %p956_p0 = scmp.ne.s32.totalorder %s1356_s4, %s955_s20  ;;  %p959_p1 = scmp.lt.u32.totalorder %s955_s20, %s1356_s4 }
  0x7b   :  { %p961_p2 = pnand %p959_p1, %p956_p0 }
  0x7d   :  { %964 = shalt.err (!%p961_p2)
}
  0x7e   :  { %s965_s10 = scalar_lea.vmem %s72_s27, 32  ;;  %p970_p4 = scmp.lt.s32.totalorder %s72_s27, %s72_s27 }
  0x7f   :  { %p966_p3 = scmp.ne.s32.totalorder %s72_s27, %s965_s10  ;;  %p971_p5 = scmp.lt.s32.totalorder %s965_s10, %s965_s10 }
  0x81   :  { %p972_p6 = por %p971_p5, %p970_p4 }
  0x83   :  { %p973_p7 = pnand %p972_p6, %p966_p3 }
  0x85   :  { %976 = shalt.err (!%p973_p7)
}
  0x86   :  { %74 = dma.hbm_to_vmem [thread:$0]  %s1356_s4, 32, %s72_s27, [#allocation9]  }
  0x87   :  { %s1089_s16 = smov [#allocation13]   ;;  %s1090_s28 = smov [#allocation16]  }
  0x88   :  { %s91_s23 = sshll.u32 %s1089_s16, 4  ;;  %s113_s29 = sshll.u32 %s1090_s28, 4  ;;  %s92_s23 = int_to_ptr.vmem [resolvable:$true] %s91_s23  ;;  %s114_s29 = int_to_ptr.vmem [resolvable:$true] %s113_s29 }
  0x89   :  { %s977_s1 = scalar_lea.hbm %s1358_s6, 256 }
  0x8a   :  { %p978_p8 = scmp.ne.s32.totalorder %s1358_s6, %s977_s1  ;;  %p981_p9 = scmp.lt.u32.totalorder %s977_s1, %s1358_s6 }
  0x8c   :  { %p983_p10 = pnand %p981_p9, %p978_p8 }
  0x8e   :  { %986 = shalt.err (!%p983_p10)
}
  0x8f   :  { %s987_s4 = scalar_lea.vmem %s92_s23, 256  ;;  %p992_p12 = scmp.lt.s32.totalorder %s92_s23, %s92_s23 }
  0x90   :  { %p988_p11 = scmp.ne.s32.totalorder %s92_s23, %s987_s4  ;;  %p993_p13 = scmp.lt.s32.totalorder %s987_s4, %s987_s4 }
  0x92   :  { %p994_p0 = por %p993_p13, %p992_p12 }
  0x94   :  { %p995_p1 = pnand %p994_p0, %p988_p11 }
  0x96   :  { %998 = shalt.err (!%p995_p1)
}
  0x97   :  { %94 = dma.hbm_to_vmem [thread:$0]  %s1358_s6, 256, %s92_s23, [#allocation12]  }
  0x98   :  { %s999_s19 = scalar_lea.hbm %s1360_s8, 256 }
  0x99   :  { %p1000_p2 = scmp.ne.s32.totalorder %s1360_s8, %s999_s19  ;;  %p1003_p3 = scmp.lt.u32.totalorder %s999_s19, %s1360_s8 }
  0x9b   :  { %p1005_p4 = pnand %p1003_p3, %p1000_p2 }
  0x9d   :  { %1008 = shalt.err (!%p1005_p4)
}
  0x9e   :  { %s1009_s3 = scalar_lea.vmem %s114_s29, 256  ;;  %p1014_p6 = scmp.lt.s32.totalorder %s114_s29, %s114_s29 }
  0x9f   :  { %p1010_p5 = scmp.ne.s32.totalorder %s114_s29, %s1009_s3  ;;  %p1015_p7 = scmp.lt.s32.totalorder %s1009_s3, %s1009_s3 }
  0xa1   :  { %p1016_p8 = por %p1015_p7, %p1014_p6 }
  0xa3   :  { %p1017_p9 = pnand %p1016_p8, %p1010_p5 }
  0xa5   :  { %1020 = shalt.err (!%p1017_p9)
}
  0xa6   :  { %116 = dma.hbm_to_vmem [thread:$0]  %s1360_s8, 256, %s114_s29, [#allocation15]  }
  0xa7   :  { %s1091_s2 = smov [#allocation19]   ;;  %s1021_s28 = scalar_lea.hbm %s1363_s11, 32 }
  0xa8   :  { %s137_s5 = sshll.u32 %s1091_s2, 4  ;;  %p1022_p10 = scmp.ne.s32.totalorder %s1363_s11, %s1021_s28  ;;  %s138_s5 = int_to_ptr.vmem [resolvable:$true] %s137_s5 }
  0xa9   :  { %p1025_p11 = scmp.lt.u32.totalorder %s1021_s28, %s1363_s11 }
  0xab   :  { %p1027_p12 = pnand %p1025_p11, %p1022_p10 }
  0xad   :  { %1030 = shalt.err (!%p1027_p12)
}
  0xae   :  { %s1031_s18 = scalar_lea.vmem %s138_s5, 32  ;;  %p1036_p0 = scmp.lt.s32.totalorder %s138_s5, %s138_s5 }
  0xaf   :  { %p1032_p13 = scmp.ne.s32.totalorder %s138_s5, %s1031_s18  ;;  %p1037_p1 = scmp.lt.s32.totalorder %s1031_s18, %s1031_s18 }
  0xb1   :  { %p1038_p2 = por %p1037_p1, %p1036_p0 }
  0xb3   :  { %p1039_p3 = pnand %p1038_p2, %p1032_p13 }
  0xb5   :  { %1042 = shalt.err (!%p1039_p3)
}
  0xb6   :  { %140 = dma.hbm_to_vmem [thread:$0]  %s1363_s11, 32, %s138_s5, [#allocation18]  }
  0xb7   :  { %1065 = dma.done.wait [#allocation3], 32  }
  0xb8   :  { %1066 = vsyncadd [#allocation3], 4294967264 }
  0xb9   :  { %1067 = dma.done.wait [#allocation6], 64  }
  0xba   :  { %1068 = vsyncadd [#allocation6], 4294967232 }
  0xbb   :  { %1069 = dma.done.wait [#allocation9], 64  }
  0xbc   :  { %1070 = vsyncadd [#allocation9], 4294967232 }
  0xbd   :  { %1071 = dma.done.wait [#allocation12], 288  }
  0xbe   :  { %1072 = vsyncadd [#allocation12], 4294967008 }
  0xbf   :  { %1073 = dma.done.wait [#allocation15], 1792  }
  0xc0   :  { %1074 = vsyncadd [#allocation15], 4294965504 }
  0xc1   :  { %1075 = dma.done.wait [#allocation18], 544  }
  0xc2   :  { %1076 = vsyncadd [#allocation18], 4294966752  ;;  %v1092_v0 = vmov 0.0   ;;  %vm272_vm0 = vcmask 1046528   ;;  %vm268_vm1 = vcmask 56320   ;;  %vm357_vm2 = vcmask 1045504  }
  0xc3   :  { %343 = vmatprep.mubr.f32.mxu0 %v1092_v0  ;;  %261 = vmatprep.mubr.f32.mxu1 %v1092_v0  ;;  %vm446_vm3 = vcmask 1041408   ;;  %v179_v1 = vld [vmem:[#allocation13 + $0x8] sm:$0x7f]  ;;  %v178_v2 = vld [vmem:[#allocation13] sm:$0x7f]  ;;  %v439_v6 = vld [vmem:[%s1361_s9 + $0x8] sm:$0xff]  ;;  %v615_v48 = vlaneseq }
  0xc4   :  { %v177_v3 = vld [vmem:[#allocation2] sm:$0x3]  ;;  %731 = vmatprep.subr.msk.mxu0 %vm272_vm0, %v179_v1  ;;  %v352_v4 = vld [vmem:[#allocation16 + $0x8] sm:$0x3f]  ;;  %v441_v7 = vld [vmem:[%s1361_s9 + $0x18] sm:$0x3] }
  0xc5   :  { %v351_v5 = vld [vmem:[#allocation16] sm:$0x3f]  ;;  %732 = vmatpush1.msk.msra.mxu0 %vm272_vm0, %v178_v2  ;;  %vm1093_vm4 = vmmov 1   ;;  %v761_v9 = vpack.c.bf16 %v441_v7, %v439_v6  ;;  %v440_v11 = vld [vmem:[%s1361_s9 + $0x10] sm:$0x3]  ;;  %v184_v13 = vld [vmem:[#allocation14 + $0x18] sm:$0xff] }
  0xc6   :  { %vm1314_vm5 = vmpackc.low %vm446_vm3, %vm1093_vm4  ;;  %733 = vmatmul.mubr.msk.f32.vlgmr.msra.gmra.mrb[0].mxu0 %vm268_vm1, %v177_v3  ;;  %734 = vmatprep.subr.msk.mxu0 %vm357_vm2, %v352_v4  ;;  %v438_v10 = vld [vmem:[%s1361_s9] sm:$0xff]  ;;  %v182_v12 = vld [vmem:[#allocation14 + $0x8] sm:$0xff]  ;;  %vm353_vm6 = vcmask 48128   ;;  %vm639_vm7 = vcmask 1043456   ;;  %vm193_vm8 = vcmask 392192   ;;  %vm442_vm9 = vcmask 80896  }
  0xc7   :  { %735 = vmatpush1.msk.msra.mxu0 %vm357_vm2, %v351_v5  ;;  %428 = vmatprep.mubr.f32.mxu0 %v1092_v0  ;;  %v749_v14 = vpack.c.bf16 %v184_v13, %v182_v12  ;;  %v181_v15 = vld [vmem:[#allocation14] sm:$0xff]  ;;  %v183_v16 = vld [vmem:[#allocation14 + $0x10] sm:$0xff]  ;;  %v186_v17 = vld [vmem:[#allocation14 + $0x28] sm:$0xff]  ;;  %v764_v28 = vpack.c.bf16 %v440_v11, %v438_v10  ;;  %vm635_vm10 = vcmask 64512   ;;  %v1094_v46 = vmov 0  }
  0xc8   :  { %763 = vmatprep.subr.msk.bf16.mxu0 %vm1314_vm5, %v761_v9  ;;  %v751_v18 = vpack.c.bf16 %v183_v16, %v181_v15  ;;  %v188_v19 = vld [vmem:[#allocation14 + $0x38] sm:$0xff]  ;;  %v185_v20 = vld [vmem:[#allocation14 + $0x20] sm:$0xff]  ;;  %v187_v21 = vld [vmem:[#allocation14 + $0x30] sm:$0xff]  ;;  %v616_v50 = vshrl.u32 %v615_v48, 7  ;;  %v1095_v59 = vmov 1966171168  }
  0xc9   :  { %750 = vmatprep.subr.bf16.mxu1 %v749_v14  ;;  %v753_v22 = vpack.c.bf16 %v188_v19, %v186_v17  ;;  %v528_v23 = vld [vmem:[#allocation17 + $0x8] sm:$0xff]  ;;  %v530_v24 = vld [vmem:[#allocation17 + $0x18] sm:$0x3]  ;;  %v755_v26 = vpack.c.bf16 %v187_v21, %v185_v20  ;;  %v189_v30 = vld [vmem:[#allocation14 + $0x40] sm:$0xff]  ;;  %v695_v60 = vunpack.c.l.s4 %v1095_v59 }
  0xca   :  { %v350_v25 = vld [vmem:[#allocation7] sm:$0x3]  ;;  %752 = vmatpush1.bf16.msra.mxu1 %v751_v18  ;;  %v192_v29 = vld [vmem:[#allocation14 + $0x58] sm:$0xff]  ;;  %v191_v31 = vld [vmem:[#allocation14 + $0x50] sm:$0xff]  ;;  %v767_v32 = vpack.c.bf16 %v530_v24, %v528_v23  ;;  %v617_v52 = vsub.s32 0, %v616_v50  ;;  %v621_v55 = vsub.s32 1, %v616_v50 }
  0xcb   :  { %v190_v27 = vld [vmem:[#allocation14 + $0x48] sm:$0xff]  ;;  %754 = vmatprep.subr.bf16.mxu1 %v753_v22  ;;  %v629_v34 = vld [vmem:[%s1364_s12] sm:$0xff]  ;;  %v759_v35 = vpack.c.bf16 %v191_v31, %v189_v30  ;;  %v527_v38 = vld [vmem:[#allocation17] sm:$0xff]  ;;  %v696_v3 = vunpack.c.0.s8 %v695_v60  ;;  %s1096_s12 = smov [#allocation20]  }
  0xcc   :  { %v757_v33 = vpack.c.bf16 %v192_v29, %v190_v27  ;;  %v744_v36 = vcombine.high %v629_v34, %v629_v34  ;;  %v743_v37 = vcombine.low %v629_v34, %v629_v34  ;;  %v529_v39 = vld [vmem:[#allocation17 + $0x10] sm:$0x3]  ;;  %v180_v40 = vld [vmem:[#allocation5] sm:$0x3]  ;;  %v627_v41 = vld [vmem:[#allocation11] sm:$0x3] }
  0xcd   :  { %v437_v42 = vld [vmem:[#allocation8] sm:$0x3]  ;;  %v770_v43 = vpack.c.bf16 %v529_v39, %v527_v38  ;;  %v628_v45 = vpack.c.bf16 %v627_v41, %v627_v41  ;;  %v526_v47 = vld [vmem:[#allocation10] sm:$0x3]  ;;  %v613_v54 = vld [vmem:[#allocation19] sm:$0x3]  ;;  %v699_v8 = vsub.s32 %v696_v3, %v616_v50 }
  0xce   :  { %736 = vmatmul.mubr.msk.f32.vlgmr.msra.gmra.mrb[0].mxu0 %vm353_vm6, %v350_v25  ;;  %756 = vmatpush1.bf16.msra.mxu1 %v755_v26  ;;  %v641_v44 = vsel %vm639_vm7, %v743_v37, 0  ;;  %v618_v61 = vrot.slane %v613_v54, %v617_v52  ;;  %v622_v63 = vrot.slane %v613_v54, %v621_v55  ;;  %s716_s20 = sshll.u32 %s1096_s12, 4  ;;  %s717_s20 = int_to_ptr.vmem [resolvable:$true] %s716_s20 }
  0xcf   :  { %766 = vmatpush1.bf16.msk.msra.mxu0 %vm1314_vm5, %v764_v28  ;;  %517 = vmatprep.mubr.f32.mxu0 %v1092_v0  ;;  %s1043_s21 = scalar_lea.vmem %s717_s20, 32  ;;  %p1048_p5 = scmp.lt.s32.totalorder %s717_s20, %s717_s20 }
  0xd0   :  { %769 = vmatprep.subr.msk.bf16.mxu0 %vm1314_vm5, %v767_v32  ;;  %758 = vmatprep.subr.bf16.mxu1 %v757_v33  ;;  %p1044_p4 = scmp.ne.s32.totalorder %s717_s20, %s1043_s21  ;;  %p1049_p6 = scmp.lt.s32.totalorder %s1043_s21, %s1043_s21 }
  0xd2   :  { %760 = vmatpush1.bf16.msra.mxu1 %v759_v35  ;;  %p1050_p7 = por %p1049_p6, %p1048_p5 }
  0xd3   :  { %745 = vmatprep.subr.msk.bf16.mxu1 %vm639_vm7, %v744_v36 }
  0xd4   :  { %p1051_p8 = pnand %p1050_p7, %p1044_p4 }
  0xd5   :  { %730 = vmatmul.mubr.msk.f32.vlgmr.msra.gmra.mrb[0].mxu1 %vm193_vm8, %v180_v40 }
  0xd6   :  { %739 = vmatmul.mubr.msk.f32.vlgmr.msra.gmra.mrb[0].mxu0 %vm442_vm9, %v437_v42  ;;  %647 = vmatpush1.bf16.msra.mxu1 %v641_v44 }
  0xd7   :  { %772 = vmatpush1.bf16.msk.msra.mxu0 %vm1314_vm5, %v770_v43  ;;  %604 = vmatprep.mubr.f32.mxu0 %v1092_v0 }
  0xd8   :  { %678 = vmatprep.mubr.bf16.mxu1 %v1094_v46 }
  0xd9   :  { %746 = vmatmul.mubr.msk.bf16.vlgmr.msra.gmra.mrb[4].mxu1 %vm635_vm10, %v628_v45 }
  0xde   :  { %742 = vmatmul.mubr.msk.f32.vlgmr.msra.gmra.mrb[0].mxu0 %vm442_vm9, %v526_v47 }
 0x1a8   :  { %v263_v49 = vpop.f32.mrb[0].mxu1 }
 0x1a9   :  { %v265_v51 = vpop.f32.mrb[1].mxu1 }
 0x1ac   :  { %v680_v53 = vpop.f32.mrb[4].mxu1 }
 0x1ad   :  { %v682_v56 = vpop.f32.mrb[5].mxu1 }
 0x1ae   :  { %v684_v57 = vpop.f32.mrb[6].mxu1 }
 0x1af   :  { %v685_v58 = vpop.f32.mrb[7].mxu1 }
 0x1b1   :  { %v606_v62 = vpop.f32.mrb[0].mxu0 }
 0x1b2   :  { %v773_v0 = vadd.f32 %v606_v62, %v263_v49  ;;  %v608_v1 = vpop.f32.mrb[1].mxu0 }
 0x1b3   :  { %v774_v2 = vadd.f32 %v608_v1, %v265_v51 }
 0x1b4   :  { %v625_v4 = vadd.f32 %v773_v0, %v618_v61 }
 0x1b5   :  { %v626_v5 = vadd.f32 %v774_v2, %v622_v63 }
 0x1b6   :  { %v687_v6 = vmul.f32 %v680_v53, %v625_v4 }
 0x1b7   :  { %v688_v7 = vmul.f32 %v682_v56, %v626_v5 }
 0x1b9   :  { %v747_v9 = vpack.c.bf16 %v688_v7, %v687_v6 }
 0x1bb   :  { %v700_v10 = vrot.slane %v747_v9, %v699_v8 }
 0x1bd   :  { %748 = vst.sshfl [vmem:[#allocation20] sm:$0x5 pattern:$0x73625140] %v700_v10 }
 0x1be   :  { %1054 = shalt.err (!%p1051_p8)
}
 0x1bf   :  { %s1055_s3 = scalar_lea.hbm %s1365_s13, 32 }
 0x1c0   :  { %p1056_p9 = scmp.ne.s32.totalorder %s1365_s13, %s1055_s3  ;;  %p1059_p10 = scmp.lt.u32.totalorder %s1055_s3, %s1365_s13 }
 0x1c2   :  { %p1061_p11 = pnand %p1059_p10, %p1056_p9 }
 0x1c4   :  { %1064 = shalt.err (!%p1061_p11)
}
 0x1c5   :  { %719 = dma.vmem_to_hbm [thread:$0]  %s717_s20, 32, %s1365_s13, [#allocation4]  }
 0x1c6   :  { %1077 = dma.done.wait [#allocation4], 32  }
 0x1c7   :  { %1078 = vsyncadd [#allocation4], 4294967264 }
 0x1c8   :  { %723 = vsyncpa [#allocation3], 1 }
 0x1c9   :  { %724 = vsyncpa [#allocation6], 1 }
 0x1ca   :  { %725 = vsyncpa [#allocation9], 1 }
 0x1cb   :  { %726 = vsyncpa [#allocation12], 1 }
 0x1cc   :  { %727 = vsyncpa [#allocation15], 1 }
 0x1cd   :  { %728 = vsyncpa [#allocation18], 1 }
 0x1ce   :  { %729 = vsyncpa [#allocation4], 1 }

</bundles_post_ra>
